<compile_context>
chip_gen: v5e
topology: v5e:2x2
jax: 0.10.0
libtpu: 0.0.40
codegen_flags: <defaults>
</compile_context>

<pallas_src>
import functools

import jax
import jax.numpy as jnp
from jax.experimental import pallas as pl
from jax.experimental.pallas import tpu as pltpu


def _onehot_dict_kernel(x_ref, *refs):
    """refs = (*dict_term_refs, o_ref); per-term matmuls are accumulated in f32."""
    o_ref = refs[-1]
    dict_refs = refs[:-1]

    x = x_ref[...]                                             # (TM, V)
    tokens = jnp.argmax(x, axis=-1)                            # (TM,) first maximal idx
    iota = jax.lax.broadcasted_iota(jnp.int32, x.shape, 1)     # (TM, V)
    # One-hot built directly in the matmul dtype (0/1 are exact even in bf16).
    onehot = (iota == tokens[:, None]).astype(dict_refs[0].dtype)

    acc = jnp.dot(onehot, dict_refs[0][...], preferred_element_type=jnp.float32)
    for d_ref in dict_refs[1:]:
        acc = acc + jnp.dot(onehot, d_ref[...], preferred_element_type=jnp.float32)
    o_ref[...] = acc.astype(o_ref.dtype)


def _round_up(x, m):
    return ((x + m - 1) // m) * m


def _vmem_capacity_bytes():
    try:
        return int(pltpu.get_tpu_info().vmem_capacity_bytes)
    except Exception:
        return 64 * 1024 * 1024          # conservative fallback (v7x per-core VMEM)


def _vmem_footprint(v, e):
    """(resident dict bytes, per-row bytes) incl. pipelining + intermediates."""
    vp, ep = _round_up(v, 128), _round_up(e, 128)   # internal lane padding
    # hi+lo bf16 (or one f32) dictionary, double-buffered by Pallas.
    dict_res = 2 * (vp * ep * 4)
    per_row = (
        2 * 4 * vp      # x tile, f32, double-buffered
        + 2 * 4 * ep    # out tile, f32, double-buffered
        + 4 * vp        # int32 iota intermediate
        + 4 * vp        # one-hot intermediate (f32 worst case / bf16 typical)
        + 4 * ep        # f32 accumulator
    )
    return dict_res, per_row


def _pick_tm(m, v, e, vmem_cap):
    """Largest MXU-aligned row tile whose footprint fits ~half of per-core VMEM."""
    budget = vmem_cap // 2               # ~64 MiB on v5e/v6e, ~32 MiB on v7x
    dict_res, per_row = _vmem_footprint(v, e)
    if dict_res > budget:
        # TODO(synk): add grid axes over V (running argmax carry) / E (output
        # column tiles) for dictionaries too large to keep resident in VMEM.
        raise NotImplementedError(
            f"dictionary ({v}x{e}) does not fit the per-core VMEM budget "
            f"({dict_res} > {budget} bytes); V/E grid split not implemented")
    tm = (budget - dict_res) // per_row
    if tm >= 512:
        tm = min((tm // 256) * 256, 2048)    # 256-aligned for v6e/v7x MXU
    elif tm >= 128:
        tm = (tm // 128) * 128
    else:
        tm = max((tm // 8) * 8, 8)           # sublane alignment floor
    if tm >= m:
        tm = m                               # single full-M block (always legal)
    return int(tm)


@functools.partial(jax.jit, static_argnames=("exact",))
def one_hot_dictionary(x, dictionary, *, exact=False):
    """
    x:          (B, N, vocab_size) float32
    dictionary: (vocab_size, emb_size) float32 (nn.Embedding weight)
    exact:      True  -> single f32 one-hot matmul (bit parity, slower MXU)
                False -> bf16 hi/lo dictionary split, two bf16 matmuls
                         accumulated in f32 (<= ~2^-16 relative error, fast)
    returns:    (B, N, emb_size) float32
    """
    B, N, V = x.shape
    Vd, E = dictionary.shape
    assert V == Vd
    M = B * N

    x2d = x.reshape(M, V)                    # metadata-only; no padded HBM copy

    if exact:
        dict_terms = (dictionary,)
    else:
        d_hi = dictionary.astype(jnp.bfloat16)
        d_lo = (dictionary - d_hi.astype(jnp.float32)).astype(jnp.bfloat16)
        dict_terms = (d_hi, d_lo)

    vmem_cap = _vmem_capacity_bytes()
    TM = _pick_tm(M, V, E, vmem_cap)
    grid = (pl.cdiv(M, TM),)                 # partial last tile handled by Pallas

    dict_res, per_row = _vmem_footprint(V, E)
    needed = dict_res + TM * per_row
    vmem_limit = int(min(max(needed * 3 // 2, 32 * 1024 * 1024),
                         vmem_cap * 3 // 4))

    cost = pl.CostEstimate(
        flops=2 * M * V * E * len(dict_terms),
        transcendentals=0,
        bytes_accessed=4 * M * V + 4 * M * E
        + sum(t.size * t.dtype.itemsize for t in dict_terms),
    )

    # NOTE: the constant-index dictionary blocks are still double-buffered by
    # Pallas (accounted for in _vmem_footprint); pl.Buffered(1) via
    # pipeline_mode= would reclaim one copy, but the bf16 split already halves
    # the resident footprint so we keep the battle-tested default here.
    out = pl.pallas_call(
        _onehot_dict_kernel,
        out_shape=jax.ShapeDtypeStruct((M, E), x.dtype),
        grid_spec=pltpu.PrefetchScalarGridSpec(
            num_scalar_prefetch=0,
            grid=grid,
            in_specs=[pl.BlockSpec((TM, V), lambda i: (i, 0))]     # streamed x tiles
            + [pl.BlockSpec((V, E), lambda i: (0, 0))              # resident dict term(s)
               for _ in dict_terms],
            out_specs=pl.BlockSpec((TM, E), lambda i: (i, 0)),
        ),
        compiler_params=pltpu.CompilerParams(
            dimension_semantics=("parallel",),                     # v7x: 2 TCs share M
            vmem_limit_bytes=vmem_limit,
        ),
        cost_estimate=cost,
    )(x2d, *dict_terms)

    return out.reshape(B, N, E)              # no slicing epilogue: logical shape written


def _reference(x, dictionary):
    return dictionary[jnp.argmax(x, axis=-1)]


if __name__ == "__main__":
    key = jax.random.PRNGKey(0)
    k_x, k_w = jax.random.split(key)

    B, N, vocab_size, emb_size = 2, 8, 16, 32

    # nn.Embedding(vocab_size, emb_size) default init is N(0, 1).
    dictionary = jax.random.normal(k_w, (vocab_size, emb_size), dtype=jnp.float32)
    x = jax.random.normal(k_x, (B, N, vocab_size), dtype=jnp.float32)

    ref = _reference(x, dictionary)

    # Fast path (default): bf16 hi/lo dictionary split; error <= ~2^-16 relative.
    out = jax.block_until_ready(one_hot_dictionary(x, dictionary))
    assert out.shape == (B, N, emb_size)
    assert jnp.allclose(out, ref, atol=1e-5, rtol=1e-4), "fast path mismatch"

    # Exact path: single f32 one-hot matmul (parity with the f32 reference).
    out_exact = jax.block_until_ready(one_hot_dictionary(x, dictionary, exact=True))
    assert jnp.allclose(out_exact, ref, atol=1e-5, rtol=1e-5), "exact path mismatch"

    print("KERNEL_OK")
</pallas_src>

<mosaic_0001>
module attributes {stable_mosaic.version = 11 : i64} {
  func.func @_onehot_dict_kernel(%arg0: i32, %arg1: memref<16x16xf32, #tpu.memory_space<vmem>>, %arg2: memref<16x32xbf16, #tpu.memory_space<vmem>>, %arg3: memref<16x32xbf16, #tpu.memory_space<vmem>>, %arg4: memref<16x32xf32, #tpu.memory_space<vmem>>) attributes {dimension_semantics = [#tpu.dimension_semantics<parallel>], iteration_bounds = array<i64: 1>, scalar_prefetch = 0 : i64, scratch_operands = 0 : i64, tpu.core_type = #tpu.core_type<tc>, window_params = [{transform_indices = @transform_0, window_bounds = array<i64: 16, 16>}, {pipeline_mode = #tpu.pipeline_mode<synchronous>, transform_indices = @transform_1, window_bounds = array<i64: 16, 32>}, {pipeline_mode = #tpu.pipeline_mode<synchronous>, transform_indices = @transform_2, window_bounds = array<i64: 16, 32>}, {transform_indices = @transform_3, window_bounds = array<i64: 16, 32>}]} {
    %c0 = arith.constant 0 : index
    %c0_0 = arith.constant 0 : index
    %0 = vector.load %arg1[%c0, %c0_0] : memref<16x16xf32, #tpu.memory_space<vmem>>, vector<16x16xf32>
    %1 = tpu.reduce_index %0 {axis = 1 : i32, kind = #tpu.reduction_kind<arg_max>} : vector<16x16xf32> -> vector<16xi32>
    %2 = tpu.iota {dimensions = array<i32: 1>} : vector<16x16xi32>
    %3 = vector.shape_cast %1 : vector<16xi32> to vector<16x1xi32>
    %4 = vector.broadcast %3 : vector<16x1xi32> to vector<16x16xi32>
    %5 = arith.cmpi eq, %2, %4 : vector<16x16xi32>
    %6 = arith.extui %5 : vector<16x16xi1> to vector<16x16xi32>
    %7 = arith.sitofp %6 : vector<16x16xi32> to vector<16x16xf32>
    %8 = arith.truncf %7 : vector<16x16xf32> to vector<16x16xbf16>
    %c0_1 = arith.constant 0 : index
    %c0_2 = arith.constant 0 : index
    %9 = vector.load %arg2[%c0_1, %c0_2] : memref<16x32xbf16, #tpu.memory_space<vmem>>, vector<16x32xbf16>
    %cst = arith.constant dense<0.000000e+00> : vector<16x32xf32>
    %10 = tpu.matmul %8, %9, %cst {dimension_numbers = #tpu.dot_dimension_numbers<[1], [0], [0], [1], [0, 0, 1, 1], [], []>} : vector<16x16xbf16>, vector<16x32xbf16>, vector<16x32xf32> -> vector<16x32xf32>
    %c0_3 = arith.constant 0 : index
    %c0_4 = arith.constant 0 : index
    %11 = vector.load %arg3[%c0_3, %c0_4] : memref<16x32xbf16, #tpu.memory_space<vmem>>, vector<16x32xbf16>
    %cst_5 = arith.constant dense<0.000000e+00> : vector<16x32xf32>
    %12 = tpu.matmul %8, %11, %cst_5 {dimension_numbers = #tpu.dot_dimension_numbers<[1], [0], [0], [1], [0, 0, 1, 1], [], []>} : vector<16x16xbf16>, vector<16x32xbf16>, vector<16x32xf32> -> vector<16x32xf32>
    %13 = arith.addf %10, %12 : vector<16x32xf32>
    %c0_6 = arith.constant 0 : index
    %c0_7 = arith.constant 0 : index
    %14 = vector.load %arg4[%c0_6, %c0_7] : memref<16x32xf32, #tpu.memory_space<vmem>>, vector<16x32xf32>
    tpu.vector_store %arg4[%c0_6, %c0_7], %13 {strides = array<i32>} : memref<16x32xf32, #tpu.memory_space<vmem>>, vector<16x32xf32>,
    return
  }
  func.func @transform_0(%arg0: i32) -> (i32, i32) {
    %c0_i32 = arith.constant 0 : i32
    %c0_i32_0 = arith.constant 0 : i32
    return %arg0, %c0_i32 : i32, i32
  }
  func.func @transform_1(%arg0: i32) -> (i32, i32) {
    %c0_i32 = arith.constant 0 : i32
    %c0_i32_0 = arith.constant 0 : i32
    %c0_i32_1 = arith.constant 0 : i32
    return %c0_i32, %c0_i32_0 : i32, i32
  }
  func.func @transform_2(%arg0: i32) -> (i32, i32) {
    %c0_i32 = arith.constant 0 : i32
    %c0_i32_0 = arith.constant 0 : i32
    %c0_i32_1 = arith.constant 0 : i32
    return %c0_i32, %c0_i32_0 : i32, i32
  }
  func.func @transform_3(%arg0: i32) -> (i32, i32) {
    %c0_i32 = arith.constant 0 : i32
    %c0_i32_0 = arith.constant 0 : i32
    return %arg0, %c0_i32 : i32, i32
  }
}

</mosaic_0001>

<bundles_post_ra>
// kernel: one_hot_dictionary.1
= control target key start
LH: loop header
LB: loop body
LE: loop exit
PB: predicated region body
PF: predicated region fallthrough
CT: control target
= control target key end

     0   :  { %vm18_vm0 = vcmask 130048   ;;  %s189_s0 = inlined_call_operand.vmem [shape: f32[16,16], index: 0, kind: input, shape index: {}]   ;;  %s190_s1 = inlined_call_operand.vmem [shape: bf16[16,32], index: 1, kind: input, shape index: {}]   ;;  %s191_s2 = inlined_call_operand.vmem [shape: bf16[16,32], index: 2, kind: input, shape index: {}]   ;;  %s192_s3 = inlined_call_operand.hbm [shape: f32[16,32], index: 3, kind: output, shape index: {}]  }
   0x1   :  { %v16_v0 = vld [vmem:[%s189_s0] sm:$0xff] }
   0x2   :  { %8 = vsyncpa [#allocation3], 0  ;;  %v19_v1 = vsel %vm18_vm0, %v16_v0, -inf  ;;  %v17_v2 = vld [vmem:[%s189_s0 + $0x8] sm:$0xff]  ;;  %v115_v4 = vld [vmem:[%s191_s2] sm:$0xff]  ;;  %v25_v6 = vlaneseq  ;;  %v146_v10 = vmov 0.0  }
   0x3   :  { %20 = vmax.index.xlane.f32.xlu0 %v19_v1  ;;  %v22_v3 = vsel %vm18_vm0, %v17_v2, -inf  ;;  %v114_v5 = vld [vmem:[%s190_s1] sm:$0xff]  ;;  %54 = vmatpush.bf16.msra.mxu0 %v115_v4  ;;  %vm81_vm3 = vcmask 261120   ;;  %s147_s0 = smov [#allocation2]   ;;  %s90_s21 = sshll.u32 %s192_s3, 4  ;;  %s91_s21 = int_to_ptr.hbm [resolvable:$true] %s90_s21 }
   0x4   :  { %74 = vmatpush.bf16.msra.mxu1 %v114_v5  ;;  %v26_v8 = vand.u32 127, %v25_v6  ;;  %s88_s1 = sshll.u32 %s147_s0, 4  ;;  %s148_s22 = smov 128   ;;  %s89_s1 = int_to_ptr.vmem [resolvable:$true] %s88_s1 }
   0x5   :  { %s149_s23 = smov 8  }
   0xb   :  { %23 = vmax.index.xlane.f32.xlu0 %v22_v3 }
  0x76   :  { %v21_v7 = vpop.xlane.xlu0 %20 }
  0x77   :  { %vm27_vm1 = vcmp.eq.s32.totalorder %v26_v8, %v21_v7 }
  0x78   :  { %v102_v11 = vsel %vm27_vm1, 1.0, %v146_v10 }
  0x7e   :  { %v24_v9 = vpop.xlane.xlu0 %23 }
  0x7f   :  { %vm28_vm2 = vcmp.eq.s32.totalorder %v26_v8, %v24_v9 }
  0x80   :  { %v103_v12 = vsel %vm28_vm2, 1.0, %v146_v10 }
  0x81   :  { %v33_v13 = vpack.c.bf16 %v103_v12, %v102_v11 }
  0x83   :  { %108 = vmatmul.msk.bf16.vlgmr.msra.gmra.mxu0 %vm18_vm0, %v33_v13  ;;  %113 = vmatmul.msk.bf16.vlgmr.msra.gmra.mxu1 %vm18_vm0, %v33_v13 }
 0x100   :  { %v56_v14 = vpop.f32.mrf.mxu0  ;;  %v76_v15 = vpop.f32.mrf.mxu1 }
 0x101   :  { %v77_v16 = vadd.f32 %v76_v15, %v56_v14 }
 0x103   :  { %82 = vst.msk [vmem:[#allocation2] sm:$0xff] %vm81_vm3, %v77_v16 }
 0x108   :  { %v58_v17 = vpop.f32.mrf.mxu0  ;;  %v78_v18 = vpop.f32.mrf.mxu1 }
 0x109   :  { %v79_v19 = vadd.f32 %v78_v18, %v58_v17 }
 0x10b   :  { %83 = vst.msk [vmem:[#allocation2 + $0x8] sm:$0xff] %vm81_vm3, %v79_v19 }
 0x10c   :  { %96 = dma.vmem_to_hbm [thread:$0]  %s89_s1, 256, %s91_s21, [#allocation3], %s148_s22, %s148_s22, %s149_s23  }
 0x10d   :  { %144 = dma.done.wait [#allocation3], 256  }
 0x10e   :  { %145 = vsyncadd [#allocation3], 4294967040 }
 0x10f   :  { %101 = vsyncpa [#allocation3], 1 }

</bundles_post_ra>
